<compile_context>
chip_gen: v6e
topology: v6e:2x2x1
jax: 0.10.0
libtpu: 0.0.40
codegen_flags: <defaults>
</compile_context>

<pallas_src>
import functools

import jax
import jax.numpy as jnp
from jax.experimental import pallas as pl
from jax.experimental.pallas import tpu as pltpu


def _mul_kernel(x1_ref, x2_ref, o_ref):
    # Elementwise product on one VMEM tile (the hot path).
    o_ref[...] = x1_ref[...] * x2_ref[...]


_LANE_CANDIDATES = (4096, 2048, 1024, 512, 256, 128)
_FUSION_BYPASS_BYTES = 1 << 20            # < 1 MiB total traffic -> let XLA fuse it
_DEFAULT_TILE_BYTES = 4 * 1024 * 1024     # ~4 MiB per input tile (v6e/v7x sweet spot)
_VMEM_HEADROOM_BYTES = 8 * 1024 * 1024
_VMEM_LIMIT_CAP = 56 * 1024 * 1024        # stay under v7x's 64 MiB physical VMEM


def _sublane_pack(dtype):
    # Sub-32-bit dtypes pack along sublanes: 8 (f32), 16 (bf16), 32 (int8/fp8).
    itemsize = jnp.dtype(dtype).itemsize
    return max(8, 32 // itemsize)


@functools.lru_cache(maxsize=1)
def _target_tile_bytes():
    """Per-input tile size chosen from the chip's VMEM capacity at trace time."""
    vmem_cap = 64 * 1024 * 1024  # conservative default (v7x per-TC VMEM)
    try:
        info = pltpu.get_tpu_info()
        vmem_cap = int(getattr(info, "vmem_capacity_bytes", vmem_cap))
    except Exception:
        pass
    # 6 buffers (2 in + 1 out, double-buffered) + headroom must fit comfortably.
    return int(min(_DEFAULT_TILE_BYTES, max(512 * 1024, vmem_cap // 16)))


def _pallas_mul_2d(x1_2d, x2_2d):
    """Elementwise multiply of a lane-dense (rows, lane) slab via pallas_call."""
    rows, lane = x1_2d.shape
    dtype = x1_2d.dtype
    itemsize = jnp.dtype(dtype).itemsize
    sub = _sublane_pack(dtype)

    # ~tile-target bytes per input, sublane-packing aligned, never > the array.
    block_rows = (_target_tile_bytes() // (lane * itemsize)) // sub * sub
    block_rows = max(sub, block_rows)
    block_rows = min(block_rows, rows)
    # Guarantee >= 2 grid steps whenever possible so ("parallel",) actually
    # shards the grid across both TensorCores on multi-TC chips (v7x).
    if rows >= 2 * sub:
        block_rows = min(block_rows, max(sub, (rows // 2) // sub * sub))

    grid = (pl.cdiv(rows, block_rows),)
    spec = pl.BlockSpec((block_rows, lane), lambda i: (i, 0))

    tile_bytes = block_rows * lane * itemsize
    # 2 in + 1 out, double-buffered = 6 tiles, plus explicit headroom.
    vmem_limit = int(min(_VMEM_LIMIT_CAP, 6 * tile_bytes + _VMEM_HEADROOM_BYTES))

    n = rows * lane
    return pl.pallas_call(
        _mul_kernel,
        out_shape=jax.ShapeDtypeStruct((rows, lane), dtype),
        grid=grid,
        in_specs=[spec, spec],
        out_specs=spec,
        compiler_params=pltpu.CompilerParams(
            dimension_semantics=("parallel",),
            vmem_limit_bytes=vmem_limit,
        ),
        cost_estimate=pl.CostEstimate(
            flops=n, transcendentals=0, bytes_accessed=3 * n * itemsize
        ),
    )(x1_2d, x2_2d)


def cus_mul6(x1, x2, *, force_pallas=False):
    """Elementwise x1 * x2 (Cus_Mul6.forward), layout-agnostic.

    force_pallas=True skips the small-size fusion bypass (used for testing the
    kernel path on tiny shapes).
    """
    assert x1.shape == x2.shape, "Cus_Mul6 kernel expects matching shapes"
    assert x1.dtype == x2.dtype, "Cus_Mul6 kernel expects matching dtypes"
    orig_shape = x1.shape
    dtype = x1.dtype
    itemsize = jnp.dtype(dtype).itemsize
    n = x1.size

    # Fusion / small-size bypass: a standalone pallas_call on a tiny,
    # memory-bound elementwise op is pure overhead and blocks XLA fusion.
    if not force_pallas and 3 * n * itemsize < _FUSION_BYPASS_BYTES:
        return x1 * x2

    x1f = x1.reshape(-1)
    x2f = x2.reshape(-1)

    # Prefer a wide lane that divides n exactly (no tail); otherwise process
    # the lane-aligned prefix in the kernel and the small tail with plain jnp.
    lane = next((L for L in _LANE_CANDIDATES if n % L == 0), None)
    if lane is None:
        lane = next((L for L in _LANE_CANDIDATES if n >= L), None)
    if lane is None:
        # n < 128: nothing lane-aligned to run through the kernel.
        return (x1f * x2f).reshape(orig_shape)

    n_prefix = (n // lane) * lane
    rows = n_prefix // lane
    out_prefix = _pallas_mul_2d(
        x1f[:n_prefix].reshape(rows, lane),
        x2f[:n_prefix].reshape(rows, lane),
    ).reshape(-1)

    if n_prefix == n:
        return out_prefix.reshape(orig_shape)

    # < lane-sized tail: plain jnp multiply (no full-array pad copies).
    tail = x1f[n_prefix:] * x2f[n_prefix:]
    return jnp.concatenate([out_prefix, tail]).reshape(orig_shape)


if __name__ == "__main__":
    key = jax.random.PRNGKey(0)
    k_w, k1, k2, k3, k4, k5, k6, k7, k8 = jax.random.split(key, 9)

    # Per-channel mixing weight: stored but unused in forward, matching the
    # PyTorch module (Cus_Mul6.weight never enters the forward graph).
    C = 4
    weight = jax.random.normal(k_w, (1, 1, C), jnp.float32)

    # --- Test 1: small NCHW f32 input -> small-size bypass path ---
    B, H, W = 2, 16, 16
    x1 = jax.random.normal(k1, (B, C, H, W), jnp.float32)
    x2 = jax.random.normal(k2, (B, C, H, W), jnp.float32)
    out = jax.block_until_ready(cus_mul6(x1, x2))
    assert out.shape == x1.shape and out.dtype == x1.dtype
    assert jnp.allclose(out, x1 * x2), "f32 bypass mismatch vs reference"

    # --- Test 2: same small shape forced through the Pallas kernel ---
    out_k = jax.block_until_ready(cus_mul6(x1, x2, force_pallas=True))
    assert jnp.allclose(out_k, x1 * x2), "f32 kernel mismatch vs reference"

    # --- Test 3: RWKV-style (B, T, C) bf16 input, forced kernel path ---
    Bt, T, Ce = 2, 8, 256
    y1 = jax.random.normal(k3, (Bt, T, Ce), jnp.float32).astype(jnp.bfloat16)
    y2 = jax.random.normal(k4, (Bt, T, Ce), jnp.float32).astype(jnp.bfloat16)
    out2 = jax.block_until_ready(cus_mul6(y1, y2, force_pallas=True))
    assert out2.shape == y1.shape and out2.dtype == y1.dtype
    assert jnp.allclose(
        out2.astype(jnp.float32), (y1 * y2).astype(jnp.float32)
    ), "bf16 kernel mismatch vs reference"

    # --- Test 4: unaligned flat size -> kernel prefix + jnp tail path ---
    z1 = jax.random.normal(k5, (3, 7, 13), jnp.float32)
    z2 = jax.random.normal(k6, (3, 7, 13), jnp.float32)
    out3 = jax.block_until_ready(cus_mul6(z1, z2, force_pallas=True))
    assert out3.shape == z1.shape
    assert jnp.allclose(out3, z1 * z2), "unaligned-tail mismatch vs reference"

    # --- Test 5: moderate (B, T, n_embd) f32 input -> natural kernel path ---
    w1 = jax.random.normal(k7, (2, 64, 2048), jnp.float32)
    w2 = jax.random.normal(k8, (2, 64, 2048), jnp.float32)
    out4 = jax.block_until_ready(cus_mul6(w1, w2))
    assert out4.shape == w1.shape
    assert jnp.allclose(out4, w1 * w2), "moderate-size mismatch vs reference"

    print("KERNEL_OK")
</pallas_src>

<mosaic_0001>
module attributes {stable_mosaic.version = 11 : i64} {
  func.func @_mul_kernel(%arg0: i32, %arg1: memref<1x2048xf32, #tpu.memory_space<vmem>>, %arg2: memref<1x2048xf32, #tpu.memory_space<vmem>>, %arg3: memref<1x2048xf32, #tpu.memory_space<vmem>>) attributes {dimension_semantics = [#tpu.dimension_semantics<parallel>], iteration_bounds = array<i64: 1>, scalar_prefetch = 0 : i64, scratch_operands = 0 : i64, tpu.core_type = #tpu.core_type<tc>, window_params = [{transform_indices = @transform_0, window_bounds = array<i64: 1, 2048>}, {transform_indices = @transform_1, window_bounds = array<i64: 1, 2048>}, {transform_indices = @transform_2, window_bounds = array<i64: 1, 2048>}]} {
    %c0 = arith.constant 0 : index
    %c0_0 = arith.constant 0 : index
    %0 = vector.load %arg1[%c0, %c0_0] : memref<1x2048xf32, #tpu.memory_space<vmem>>, vector<1x2048xf32>
    %c0_1 = arith.constant 0 : index
    %c0_2 = arith.constant 0 : index
    %1 = vector.load %arg2[%c0_1, %c0_2] : memref<1x2048xf32, #tpu.memory_space<vmem>>, vector<1x2048xf32>
    %2 = arith.mulf %0, %1 : vector<1x2048xf32>
    %c0_3 = arith.constant 0 : index
    %c0_4 = arith.constant 0 : index
    %3 = vector.load %arg3[%c0_3, %c0_4] : memref<1x2048xf32, #tpu.memory_space<vmem>>, vector<1x2048xf32>
    tpu.vector_store %arg3[%c0_3, %c0_4], %2 {strides = array<i32>} : memref<1x2048xf32, #tpu.memory_space<vmem>>, vector<1x2048xf32>,
    return
  }
  func.func @transform_0(%arg0: i32) -> (i32, i32) {
    %c0_i32 = arith.constant 0 : i32
    %c0_i32_0 = arith.constant 0 : i32
    return %arg0, %c0_i32 : i32, i32
  }
  func.func @transform_1(%arg0: i32) -> (i32, i32) {
    %c0_i32 = arith.constant 0 : i32
    %c0_i32_0 = arith.constant 0 : i32
    return %arg0, %c0_i32 : i32, i32
  }
  func.func @transform_2(%arg0: i32) -> (i32, i32) {
    %c0_i32 = arith.constant 0 : i32
    %c0_i32_0 = arith.constant 0 : i32
    return %arg0, %c0_i32 : i32, i32
  }
}

</mosaic_0001>

<bundles_post_ra>
// kernel: tpu_custom_call.1
= control target key start
LH: loop header
LB: loop body
LE: loop exit
PB: predicated region body
PF: predicated region fallthrough
CT: control target
= control target key end

     0   :  { %7 = vsyncpa [#allocation3], 0  ;;  %s156_s0 = inlined_call_operand.hbm [shape: f32[1,2048], index: 0, kind: input, shape index: {}]   ;;  %s157_s1 = inlined_call_operand.hbm [shape: f32[1,2048], index: 1, kind: input, shape index: {}]   ;;  %s158_s2 = inlined_call_operand.hbm [shape: f32[1,2048], index: 2, kind: output, shape index: {}]  }
   0x1   :  { %8 = vsyncpa [#allocation6], 0 }
   0x2   :  { %9 = vsyncpa [#allocation4], 0  ;;  %s129_s9 = smov [#allocation2]   ;;  %s130_s11 = smov [#allocation5]  }
   0x3   :  { %s16_s10 = sshll.u32 %s129_s9, 4  ;;  %s26_s12 = sshll.u32 %s130_s11, 4  ;;  %s17_s10 = int_to_ptr.vmem [resolvable:$true] %s16_s10  ;;  %s27_s12 = int_to_ptr.vmem [resolvable:$true] %s26_s12 }
   0x4   :  { %s71_s13 = scalar_lea.vmem %s17_s10, 256  ;;  %p76_p1 = scmp.lt.s32.totalorder %s17_s10, %s17_s10 }
   0x5   :  { %p72_p0 = scmp.ne.s32.totalorder %s17_s10, %s71_s13  ;;  %p77_p2 = scmp.lt.s32.totalorder %s71_s13, %s71_s13 }
   0x7   :  { %p78_p3 = por %p77_p2, %p76_p1 }
   0x9   :  { %p79_p4 = pnand %p78_p3, %p72_p0 }
   0xb   :  { %82 = shalt.err (!%p79_p4)
}
   0xc   :  { %19 = dma.hbm_to_vmem [thread:$0]  %s156_s0, 256, %s17_s10, [#allocation3]  }
   0xd   :  { %s91_s16 = scalar_lea.vmem %s27_s12, 256  ;;  %p96_p6 = scmp.lt.s32.totalorder %s27_s12, %s27_s12 }
   0xe   :  { %p92_p5 = scmp.ne.s32.totalorder %s27_s12, %s91_s16  ;;  %p97_p7 = scmp.lt.s32.totalorder %s91_s16, %s91_s16 }
  0x10   :  { %p98_p8 = por %p97_p7, %p96_p6 }
  0x12   :  { %p99_p9 = pnand %p98_p8, %p92_p5 }
  0x14   :  { %102 = shalt.err (!%p99_p9)
}
  0x15   :  { %29 = dma.hbm_to_vmem [thread:$0]  %s157_s1, 256, %s27_s12, [#allocation6]  }
  0x16   :  { %123 = dma.done.wait [#allocation3], 256  }
  0x17   :  { %124 = vsyncadd [#allocation3], 4294967040 }
  0x18   :  { %125 = dma.done.wait [#allocation6], 256  }
  0x19   :  { %126 = vsyncadd [#allocation6], 4294967040  ;;  %s131_s19 = smov [#allocation7]   ;;  %v36_v0 = vld [vmem:[#allocation2] sm:$0xff]  ;;  %v38_v1 = vld [vmem:[#allocation5] sm:$0xff] }
  0x1a   :  { %s50_s20 = sshll.u32 %s131_s19, 4  ;;  %v37_v2 = vld [vmem:[#allocation2 + $0x8] sm:$0xff]  ;;  %v40_v3 = vmul.f32 %v38_v1, %v36_v0  ;;  %v39_v4 = vld [vmem:[#allocation5 + $0x8] sm:$0xff]  ;;  %s51_s20 = int_to_ptr.vmem [resolvable:$true] %s50_s20 }
  0x1b   :  { %v41_v5 = vmul.f32 %v39_v4, %v37_v2  ;;  %s103_s0 = scalar_lea.vmem %s51_s20, 256  ;;  %p108_p11 = scmp.lt.s32.totalorder %s51_s20, %s51_s20 }
  0x1c   :  { %42 = vst [vmem:[#allocation7] sm:$0xff] %v40_v3  ;;  %p104_p10 = scmp.ne.s32.totalorder %s51_s20, %s103_s0  ;;  %p109_p12 = scmp.lt.s32.totalorder %s103_s0, %s103_s0 }
  0x1d   :  { %43 = vst [vmem:[#allocation7 + $0x8] sm:$0xff] %v41_v5 }
  0x1e   :  { %p110_p13 = por %p109_p12, %p108_p11 }
  0x20   :  { %p111_p0 = pnand %p110_p13, %p104_p10 }
  0x22   :  { %114 = shalt.err (!%p111_p0)
}
  0x23   :  { %53 = dma.vmem_to_hbm [thread:$0]  %s51_s20, 256, %s158_s2, [#allocation4]  }
  0x24   :  { %127 = dma.done.wait [#allocation4], 256  }
  0x25   :  { %128 = vsyncadd [#allocation4], 4294967040 }
  0x26   :  { %57 = vsyncpa [#allocation3], 1 }
  0x27   :  { %58 = vsyncpa [#allocation6], 1 }
  0x28   :  { %59 = vsyncpa [#allocation4], 1 }

</bundles_post_ra>
